<compile_context>
chip_gen: v6e
topology: v6e:2x2x1
jax: 0.10.0
libtpu: 0.0.40
codegen_flags: <defaults>
</compile_context>

<pallas_src>
import functools

import jax
import jax.numpy as jnp
from jax.experimental import pallas as pl
from jax.experimental.pallas import tpu as pltpu

_SUBLANE = 8
_LANE = 128


def _actor_kernel(x_ref, w1_ref, b1_ref, w2_ref, b2_ref, w3_ref, b3_ref,
                  o_ref, *, precision):
    """One batch tile fused in VMEM, feature-major.

    x_ref : (tile, in)          batch-major, exactly as stored in HBM
    wN    : (out_n, in_n)       PyTorch-native layout
    bN    : (out_n, 1)          column bias (broadcasts over the lane/batch axis)
    o_ref : (out_size, tile)    batch on the lane axis -> lane-dense stores
    """
    cdt = w1_ref.dtype  # matmul-input dtype (f32 or bf16); accumulation is f32

    # Layer 1: W1 @ x^T via a last-dim x last-dim contraction; the transpose
    # is handled inside the matmul lowering (no explicit XLU transpose).
    h = jax.lax.dot_general(
        w1_ref[...], x_ref[...].astype(cdt),
        dimension_numbers=(((1,), (1,)), ((), ())),
        preferred_element_type=jnp.float32, precision=precision)
    h = jnp.maximum(h + b1_ref[...], 0.0).astype(cdt)              # (hid, tile)

    h = jnp.dot(w2_ref[...], h,
                preferred_element_type=jnp.float32, precision=precision)
    h = jnp.maximum(h + b2_ref[...], 0.0).astype(cdt)              # (hid, tile)

    y = jnp.dot(w3_ref[...], h,
                preferred_element_type=jnp.float32, precision=precision)
    o_ref[...] = jnp.tanh(y + b3_ref[...]).astype(o_ref.dtype)     # (out, tile)


def _round_up(x, m):
    return ((x + m - 1) // m) * m


def _choose_tiling(batch, batch_tile):
    """Pick (tile, n_tiles, padded_batch) with small padding waste.

    Small batches: one grid step, block == full array (only 8-row alignment).
    Large batches: >=2 lane-aligned (128) tiles sized from the batch itself
    instead of rounding the batch up to a fixed tile, so waste is bounded by
    ~128 rows per tile.  >=2 tiles lets the "parallel" grid axis use both
    TensorCores on v7x (no-op on single-TC v5e/v6e).
    """
    b8 = _round_up(batch, _SUBLANE)
    if b8 < 8 * _LANE:                       # <1024 rows: not worth splitting
        return b8, 1, b8
    n_tiles = max(pl.cdiv(b8, batch_tile), 2)
    tile = _round_up(pl.cdiv(b8, n_tiles), _LANE)
    n_tiles = pl.cdiv(b8, tile)
    return tile, n_tiles, tile * n_tiles


def actor_forward(state, params, *, batch_tile=4096, use_bf16_matmul=True):
    """Fused 3-layer MLP forward; weights stay VMEM-resident across batch tiles."""
    w1, b1, w2, b2, w3, b3 = params
    batch, in_size = state.shape
    hid = w1.shape[0]
    out_size = w3.shape[0]

    if use_bf16_matmul:
        # Full-rate single-pass MXU on v5e/v6e/v7x; halves weight + state DMA.
        # Accumulation, bias add, ReLU and tanh remain f32 inside the kernel.
        w1, w2, w3 = (w.astype(jnp.bfloat16) for w in (w1, w2, w3))
        state = state.astype(jnp.bfloat16)   # cast once here, not per tile
        precision = None                     # DEFAULT: single-pass bf16 MXU
        mxu_passes = 1
    else:
        # Accuracy/debug path: exact f32 matmuls (multi-pass MXU decomposition).
        precision = jax.lax.Precision.HIGHEST
        mxu_passes = 6                       # reflect multi-pass cost honestly

    tile, n_tiles, padded = _choose_tiling(batch, batch_tile)
    if padded != batch:
        state = jnp.pad(state, ((0, padded - batch), (0, 0)))

    # Constant index_map => block index never changes => Pallas keeps these
    # tiles resident in VMEM across all grid steps (no per-tile re-DMA).
    def resident(a):
        zeros = (0,) * a.ndim
        return pl.BlockSpec(a.shape, lambda i: zeros)

    flops = 2 * padded * (in_size * hid + hid * hid + hid * out_size) * mxu_passes
    bytes_accessed = (
        padded * in_size * state.dtype.itemsize
        + padded * out_size * 4
        + sum(int(a.size) * a.dtype.itemsize for a in (w1, b1, w2, b2, w3, b3)))

    kernel = functools.partial(_actor_kernel, precision=precision)

    out = pl.pallas_call(
        kernel,
        out_shape=jax.ShapeDtypeStruct((out_size, padded), jnp.float32),
        grid=(n_tiles,),
        in_specs=[
            # Streaming operand (batch tiles).
            # TODO(synk): if xprof ever shows exposed input DMA at very large
            # tiles, add pipeline_mode=pl.Buffered(3) to this spec only.
            pl.BlockSpec((tile, in_size), lambda i: (i, 0)),
            resident(w1), resident(b1),
            resident(w2), resident(b2),
            resident(w3), resident(b3),
        ],
        # Lane-dense output: batch on the 128-lane axis, out_size on sublanes.
        out_specs=pl.BlockSpec((out_size, tile), lambda i: (0, i)),
        compiler_params=pltpu.CompilerParams(
            dimension_semantics=("parallel",),   # 2 TCs on v7x; no-op v5e/v6e
        ),
        cost_estimate=pl.CostEstimate(
            flops=int(flops),
            transcendentals=int(padded * out_size),   # tanh
            bytes_accessed=int(bytes_accessed),
        ),
    )(state, w1, b1, w2, b2, w3, b3)

    # (out_size, padded) -> (batch, out_size); tiny (8 x batch) XLA transpose.
    return out[:, :batch].T


def init_actor_params(key, input_size, hidden_size, output_size):
    """Deterministic synthetic params, PyTorch-native (out, in) weight layout."""
    ks = jax.random.split(key, 6)

    def linear(kw, kb, fan_in, fan_out):
        bound = 1.0 / jnp.sqrt(fan_in)
        w = jax.random.uniform(kw, (fan_out, fan_in), jnp.float32, -bound, bound)
        b = jax.random.uniform(kb, (fan_out, 1), jnp.float32, -bound, bound)
        return w, b

    w1, b1 = linear(ks[0], ks[1], input_size, hidden_size)
    w2, b2 = linear(ks[2], ks[3], hidden_size, hidden_size)
    w3, b3 = linear(ks[4], ks[5], hidden_size, output_size)
    return (w1, b1, w2, b2, w3, b3)


def actor_ref(state, params, *, matmul_dtype=jnp.float32):
    """Pure-JAX reference.  matmul_dtype=bfloat16 mirrors the kernel's bf16
    path: matmul inputs rounded to bf16, all accumulation/activations in f32."""
    w1, b1, w2, b2, w3, b3 = params
    hp = jax.lax.Precision.HIGHEST

    def cast(a):
        return a.astype(matmul_dtype).astype(jnp.float32)

    x = cast(state)
    h = jnp.maximum(jnp.dot(x, cast(w1).T, precision=hp) + b1.T, 0.0)
    h = jnp.maximum(jnp.dot(cast(h), cast(w2).T, precision=hp) + b2.T, 0.0)
    return jnp.tanh(jnp.dot(cast(h), cast(w3).T, precision=hp) + b3.T)


if __name__ == "__main__":
    INPUT_SIZE, HIDDEN_SIZE, OUTPUT_SIZE = 16, 32, 8

    key = jax.random.PRNGKey(0)
    k_params, k_small, k_mid, k_big = jax.random.split(key, 4)
    params = init_actor_params(k_params, INPUT_SIZE, HIDDEN_SIZE, OUTPUT_SIZE)

    # 1) Small batch, exact-f32 path (single full-array block): tight check.
    s_small = jax.random.normal(k_small, (8, INPUT_SIZE), dtype=jnp.float32)
    out = jax.block_until_ready(
        actor_forward(s_small, params, use_bf16_matmul=False))
    assert out.shape == (8, OUTPUT_SIZE), out.shape
    assert jnp.allclose(out, actor_ref(s_small, params), atol=1e-5, rtol=1e-5), \
        "mismatch vs reference (f32 path)"

    # 2) Non-aligned batch, default bf16-matmul path (pads 300 -> 304 only).
    s_mid = jax.random.normal(k_mid, (300, INPUT_SIZE), dtype=jnp.float32)
    out = jax.block_until_ready(actor_forward(s_mid, params))
    assert out.shape == (300, OUTPUT_SIZE), out.shape
    assert jnp.allclose(out, actor_ref(s_mid, params, matmul_dtype=jnp.bfloat16),
                        atol=1e-3, rtol=1e-3), "mismatch vs bf16-input reference"
    assert jnp.allclose(out, actor_ref(s_mid, params),
                        atol=5e-2, rtol=5e-2), "bf16 path too far from f32 reference"

    # 3) Multi-tile batch: exercises the batch grid, resident weights and the
    #    >=2-tile split used for v7x's two TensorCores.
    s_big = jax.random.normal(k_big, (2500, INPUT_SIZE), dtype=jnp.float32)
    out = jax.block_until_ready(actor_forward(s_big, params, batch_tile=1024))
    assert out.shape == (2500, OUTPUT_SIZE), out.shape
    assert jnp.allclose(out, actor_ref(s_big, params, matmul_dtype=jnp.bfloat16),
                        atol=1e-3, rtol=1e-3), "mismatch vs bf16-input reference (tiled)"

    print("KERNEL_OK")
</pallas_src>

<mosaic_0001>
module attributes {stable_mosaic.version = 11 : i64} {
  func.func @_actor_kernel(%arg0: i32, %arg1: memref<8x16xf32, #tpu.memory_space<vmem>>, %arg2: memref<32x16xf32, #tpu.memory_space<vmem>>, %arg3: memref<32x1xf32, #tpu.memory_space<vmem>>, %arg4: memref<32x32xf32, #tpu.memory_space<vmem>>, %arg5: memref<32x1xf32, #tpu.memory_space<vmem>>, %arg6: memref<8x32xf32, #tpu.memory_space<vmem>>, %arg7: memref<8x1xf32, #tpu.memory_space<vmem>>, %arg8: memref<8x8xf32, #tpu.memory_space<vmem>>) attributes {dimension_semantics = [#tpu.dimension_semantics<parallel>], iteration_bounds = array<i64: 1>, scalar_prefetch = 0 : i64, scratch_operands = 0 : i64, tpu.core_type = #tpu.core_type<tc>, window_params = [{transform_indices = @transform_0, window_bounds = array<i64: 8, 16>}, {pipeline_mode = #tpu.pipeline_mode<synchronous>, transform_indices = @transform_1, window_bounds = array<i64: 32, 16>}, {pipeline_mode = #tpu.pipeline_mode<synchronous>, transform_indices = @transform_2, window_bounds = array<i64: 32, 1>}, {pipeline_mode = #tpu.pipeline_mode<synchronous>, transform_indices = @transform_3, window_bounds = array<i64: 32, 32>}, {pipeline_mode = #tpu.pipeline_mode<synchronous>, transform_indices = @transform_4, window_bounds = array<i64: 32, 1>}, {pipeline_mode = #tpu.pipeline_mode<synchronous>, transform_indices = @transform_5, window_bounds = array<i64: 8, 32>}, {pipeline_mode = #tpu.pipeline_mode<synchronous>, transform_indices = @transform_6, window_bounds = array<i64: 8, 1>}, {transform_indices = @transform_7, window_bounds = array<i64: 8, 8>}]} {
    %c0 = arith.constant 0 : index
    %c0_0 = arith.constant 0 : index
    %0 = vector.load %arg2[%c0, %c0_0] : memref<32x16xf32, #tpu.memory_space<vmem>>, vector<32x16xf32>
    %c0_1 = arith.constant 0 : index
    %c0_2 = arith.constant 0 : index
    %1 = vector.load %arg1[%c0_1, %c0_2] : memref<8x16xf32, #tpu.memory_space<vmem>>, vector<8x16xf32>
    %cst = arith.constant dense<0.000000e+00> : vector<32x8xf32>
    %2 = tpu.matmul %0, %1, %cst {dimension_numbers = #tpu.dot_dimension_numbers<[1], [1], [0], [0], [0, 0, 1, 0], [], []>, precision = #tpu.contract_precision<fp32>} : vector<32x16xf32>, vector<8x16xf32>, vector<32x8xf32> -> vector<32x8xf32>
    %c0_3 = arith.constant 0 : index
    %c0_4 = arith.constant 0 : index
    %3 = vector.load %arg3[%c0_3, %c0_4] : memref<32x1xf32, #tpu.memory_space<vmem>>, vector<32x1xf32>
    %4 = vector.broadcast %3 : vector<32x1xf32> to vector<32x8xf32>
    %5 = arith.addf %2, %4 : vector<32x8xf32>
    %cst_5 = arith.constant 0.000000e+00 : f32
    %6 = vector.broadcast %cst_5 : f32 to vector<32x8xf32>
    %7 = arith.maximumf %5, %6 : vector<32x8xf32>
    %c0_6 = arith.constant 0 : index
    %c0_7 = arith.constant 0 : index
    %8 = vector.load %arg4[%c0_6, %c0_7] : memref<32x32xf32, #tpu.memory_space<vmem>>, vector<32x32xf32>
    %cst_8 = arith.constant dense<0.000000e+00> : vector<32x8xf32>
    %9 = tpu.matmul %8, %7, %cst_8 {dimension_numbers = #tpu.dot_dimension_numbers<[1], [0], [0], [1], [0, 0, 1, 1], [], []>, precision = #tpu.contract_precision<fp32>} : vector<32x32xf32>, vector<32x8xf32>, vector<32x8xf32> -> vector<32x8xf32>
    %c0_9 = arith.constant 0 : index
    %c0_10 = arith.constant 0 : index
    %10 = vector.load %arg5[%c0_9, %c0_10] : memref<32x1xf32, #tpu.memory_space<vmem>>, vector<32x1xf32>
    %11 = vector.broadcast %10 : vector<32x1xf32> to vector<32x8xf32>
    %12 = arith.addf %9, %11 : vector<32x8xf32>
    %cst_11 = arith.constant 0.000000e+00 : f32
    %13 = vector.broadcast %cst_11 : f32 to vector<32x8xf32>
    %14 = arith.maximumf %12, %13 : vector<32x8xf32>
    %c0_12 = arith.constant 0 : index
    %c0_13 = arith.constant 0 : index
    %15 = vector.load %arg6[%c0_12, %c0_13] : memref<8x32xf32, #tpu.memory_space<vmem>>, vector<8x32xf32>
    %cst_14 = arith.constant dense<0.000000e+00> : vector<8x8xf32>
    %16 = tpu.matmul %15, %14, %cst_14 {dimension_numbers = #tpu.dot_dimension_numbers<[1], [0], [0], [1], [0, 0, 1, 1], [], []>, precision = #tpu.contract_precision<fp32>} : vector<8x32xf32>, vector<32x8xf32>, vector<8x8xf32> -> vector<8x8xf32>
    %c0_15 = arith.constant 0 : index
    %c0_16 = arith.constant 0 : index
    %17 = vector.load %arg7[%c0_15, %c0_16] : memref<8x1xf32, #tpu.memory_space<vmem>>, vector<8x1xf32>
    %18 = vector.broadcast %17 : vector<8x1xf32> to vector<8x8xf32>
    %19 = arith.addf %16, %18 : vector<8x8xf32>
    %20 = math.tanh %19 : vector<8x8xf32>
    %c0_17 = arith.constant 0 : index
    %c0_18 = arith.constant 0 : index
    %21 = vector.load %arg8[%c0_17, %c0_18] : memref<8x8xf32, #tpu.memory_space<vmem>>, vector<8x8xf32>
    tpu.vector_store %arg8[%c0_17, %c0_18], %20 {strides = array<i32>} : memref<8x8xf32, #tpu.memory_space<vmem>>, vector<8x8xf32>,
    return
  }
  func.func @transform_0(%arg0: i32) -> (i32, i32) {
    %c0_i32 = arith.constant 0 : i32
    %c0_i32_0 = arith.constant 0 : i32
    return %arg0, %c0_i32 : i32, i32
  }
  func.func @transform_1(%arg0: i32) -> (i32, i32) {
    %c0_i32 = arith.constant 0 : i32
    %c0_i32_0 = arith.constant 0 : i32
    %c0_i32_1 = arith.constant 0 : i32
    return %c0_i32, %c0_i32_0 : i32, i32
  }
  func.func @transform_2(%arg0: i32) -> (i32, i32) {
    %c0_i32 = arith.constant 0 : i32
    %c0_i32_0 = arith.constant 0 : i32
    %c0_i32_1 = arith.constant 0 : i32
    return %c0_i32, %c0_i32_0 : i32, i32
  }
  func.func @transform_3(%arg0: i32) -> (i32, i32) {
    %c0_i32 = arith.constant 0 : i32
    %c0_i32_0 = arith.constant 0 : i32
    %c0_i32_1 = arith.constant 0 : i32
    return %c0_i32, %c0_i32_0 : i32, i32
  }
  func.func @transform_4(%arg0: i32) -> (i32, i32) {
    %c0_i32 = arith.constant 0 : i32
    %c0_i32_0 = arith.constant 0 : i32
    %c0_i32_1 = arith.constant 0 : i32
    return %c0_i32, %c0_i32_0 : i32, i32
  }
  func.func @transform_5(%arg0: i32) -> (i32, i32) {
    %c0_i32 = arith.constant 0 : i32
    %c0_i32_0 = arith.constant 0 : i32
    %c0_i32_1 = arith.constant 0 : i32
    return %c0_i32, %c0_i32_0 : i32, i32
  }
  func.func @transform_6(%arg0: i32) -> (i32, i32) {
    %c0_i32 = arith.constant 0 : i32
    %c0_i32_0 = arith.constant 0 : i32
    %c0_i32_1 = arith.constant 0 : i32
    return %c0_i32, %c0_i32_0 : i32, i32
  }
  func.func @transform_7(%arg0: i32) -> (i32, i32) {
    %c0_i32 = arith.constant 0 : i32
    %c0_i32_0 = arith.constant 0 : i32
    return %c0_i32, %arg0 : i32, i32
  }
}

</mosaic_0001>

<bundles_post_ra>
// kernel: tpu_custom_call.1
= control target key start
LH: loop header
LB: loop body
LE: loop exit
PB: predicated region body
PF: predicated region fallthrough
CT: control target
= control target key end

     0   :  { %vm56_vm0 = vcmask 130048   ;;  %v2158_v8 = vmov 0   ;;  %s2476_s0 = inlined_call_operand.vmem [shape: f32[8,16], index: 0, kind: input, shape index: {}]   ;;  %s2477_s1 = inlined_call_operand.vmem [shape: f32[32,16], index: 1, kind: input, shape index: {}]   ;;  %s2478_s2 = inlined_call_operand.vmem [shape: f32[32,1], index: 2, kind: input, shape index: {}]   ;;  %s2479_s3 = inlined_call_operand.vmem [shape: f32[32,32], index: 3, kind: input, shape index: {}]   ;;  %s2480_s4 = inlined_call_operand.vmem [shape: f32[32,1], index: 4, kind: input, shape index: {}]   ;;  %s2481_s5 = inlined_call_operand.vmem [shape: f32[8,32], index: 5, kind: input, shape index: {}]   ;;  %s2482_s6 = inlined_call_operand.vmem [shape: f32[8,1], index: 6, kind: input, shape index: {}]   ;;  %s2483_s7 = inlined_call_operand.hbm [shape: f32[8,8], index: 7, kind: output, shape index: {}]  }
   0x1   :  { %v31_v0 = vld [vmem:[%s2476_s0] sm:$0xff]  ;;  %v28_v2 = vld [vmem:[%s2477_s1 + $0x8] sm:$0xff]  ;;  %v29_v6 = vld [vmem:[%s2477_s1 + $0x10] sm:$0xff]  ;;  %2132 = vset.pattern.permute.xlu0 %v2158_v8  ;;  %2133 = vset.pattern.permute.xlu1 %v2158_v8 }
   0x2   :  { %v27_v1 = vld [vmem:[%s2477_s1] sm:$0xff]  ;;  %v70_v3 = vsel %vm56_vm0, %v31_v0, 0  ;;  %v61_v5 = vsel %vm56_vm0, %v28_v2, 0  ;;  %v30_v7 = vld [vmem:[%s2477_s1 + $0x18] sm:$0xff]  ;;  %v64_v13 = vsel %vm56_vm0, %v29_v6, 0  ;;  %v33_v14 = vld [vmem:[%s2478_s2 + $0x8] sm:$0xff] }
   0x3   :  { %v58_v4 = vsel %vm56_vm0, %v27_v1, 0  ;;  %v35_v9 = vld [vmem:[%s2478_s2 + $0x18] sm:$0xff]  ;;  %v2223_v10 = vand.u32 4294901760, %v70_v3  ;;  %v2227_v12 = vand.u32 4294901760, %v61_v5  ;;  %v2233_v15 = vand.u32 4294901760, %v64_v13  ;;  %43 = vperm.xlu1 %2133, %v33_v14   ;;  %v34_v17 = vld [vmem:[%s2478_s2 + $0x10] sm:$0xff] }
   0x4   :  { %v2225_v11 = vand.u32 4294901760, %v58_v4  ;;  %53 = vperm.xlu0 %2132, %v35_v9   ;;  %v67_v16 = vsel %vm56_vm0, %v30_v7, 0  ;;  %v32_v22 = vld [vmem:[%s2478_s2] sm:$0xff] }
   0x5   :  { %1930 = vmatprep.subr.mxu0 %v2223_v10  ;;  %v210_v19 = vsub.f32 %v70_v3, %v2223_v10  ;;  %v149_v20 = vsub.f32 %v61_v5, %v2227_v12  ;;  %v2244_v21 = vand.u32 4294901760, %v67_v16  ;;  %v159_v23 = vsub.f32 %v64_v13, %v2233_v15 }
   0x6   :  { %v139_v18 = vsub.f32 %v58_v4, %v2225_v11  ;;  %1940 = vmatprep.mubr.f32.mxu1 %v2225_v11  ;;  %1931 = vmatpush3.xpose.msra.mxu0 %v2223_v10 }
   0x7   :  { %12 = vsyncpa [#allocation3], 0  ;;  %v211_v25 = vand.u32 4294901760, %v210_v19  ;;  %v150_v26 = vand.u32 4294901760, %v149_v20  ;;  %1946 = vmatprep.subr.mxu0 %v210_v19  ;;  %v169_v27 = vsub.f32 %v67_v16, %v2244_v21  ;;  %v160_v28 = vand.u32 4294901760, %v159_v23  ;;  %38 = vperm.xlu1 %2133, %v32_v22   ;;  %v658_v29 = vld [vmem:[%s2480_s4 + $0x18] sm:$0xff] }
   0x8   :  { %v140_v24 = vand.u32 4294901760, %v139_v18  ;;  %48 = vperm.xlu0 %2132, %v34_v17   ;;  %v657_v34 = vld [vmem:[%s2480_s4 + $0x10] sm:$0xff]  ;;  %v656_v42 = vld [vmem:[%s2480_s4 + $0x8] sm:$0xff]  ;;  %v655_v43 = vld [vmem:[%s2480_s4] sm:$0xff]  ;;  %vm679_vm1 = vcmask 261120   ;;  %vm2160_vm2 = vmmov 0  }
   0x9   :  { %v212_v31 = vsub.f32 %v210_v19, %v211_v25  ;;  %v151_v32 = vsub.f32 %v149_v20, %v150_v26  ;;  %v170_v33 = vand.u32 4294901760, %v169_v27  ;;  %v161_v35 = vsub.f32 %v159_v23, %v160_v28  ;;  %v1311_v44 = vld [vmem:[%s2482_s6] sm:$0xff] }
   0xa   :  { %v141_v30 = vsub.f32 %v139_v18, %v140_v24  ;;  %v651_v45 = vld [vmem:[%s2479_s3] sm:$0xff]  ;;  %vm1806_vm3 = vcmask 64512  }
   0xb   :  { %v213_v37 = vand.u32 4294901760, %v212_v31  ;;  %v152_v38 = vand.u32 4294901760, %v151_v32  ;;  %v171_v39 = vsub.f32 %v169_v27, %v170_v33  ;;  %v162_v40 = vand.u32 4294901760, %v161_v35  ;;  %671 = vperm.xlu1 %2133, %v657_v34  }
   0xc   :  { %v142_v36 = vand.u32 4294901760, %v141_v30  ;;  %676 = vperm.xlu0 %2132, %v658_v29   ;;  %v681_v46 = vsel %vm679_vm1, %v651_v45, 0 }
   0xd   :  { %1938 = vmatprep.subr.mxu1 %v213_v37  ;;  %v172_v41 = vand.u32 4294901760, %v171_v39  ;;  %v2286_v47 = vand.u32 4294901760, %v681_v46 }
   0xe   :  { %1932 = vmatprep.mubr.f32.mxu0 %v142_v36  ;;  %1939 = vmatpush3.xpose.msra.mxu1 %v213_v37 }
   0xf   :  { %1933 = vmatmul.mubr.f32.vlgmr.msra.gmra.mxu0 %v152_v38  ;;  %1954 = vmatprep.subr.mxu1 %v2223_v10  ;;  %v2289_v48 = vsub.f32 %v681_v46, %v2286_v47 }
  0x10   :  { %1947 = vmatpush3.xpose.msra.mxu0 %v210_v19  ;;  %1935 = vmatprep.mubr.f32.mxu0 %v162_v40 }
  0x11   :  { %1962 = vmatprep.subr.mxu0 %v211_v25  ;;  %1941 = vmatmul.mubr.f32.vlgmr.msra.gmra.mxu1 %v2227_v12  ;;  %v763_v49 = vand.u32 4294901760, %v2289_v48 }
  0x12   :  { %666 = vperm.xlu0 %2132, %v656_v42   ;;  %1955 = vmatpush3.xpose.msra.mxu1 %v2223_v10 }
  0x13   :  { %1936 = vmatmul.mubr.f32.gmra.mxu0 %v172_v41  ;;  %1943 = vmatprep.mubr.f32.mxu1 %v2233_v15  ;;  %v764_v50 = vsub.f32 %v2289_v48, %v763_v49 }
  0x14   :  { %1948 = vmatprep.mubr.f32.mxu0 %v139_v18  ;;  %1970 = vmatprep.subr.mxu1 %v2223_v10 }
  0x15   :  { %661 = vperm.xlu1 %2133, %v655_v43   ;;  %1944 = vmatmul.mubr.f32.gmra.mxu1 %v2244_v21  ;;  %v765_v51 = vand.u32 4294901760, %v764_v50 }
  0x16   :  { %1314 = vperm.xlu0 %2132, %v1311_v44   ;;  %1956 = vmatprep.mubr.f32.mxu1 %v140_v24 }
  0x17   :  { %1949 = vmatmul.mubr.f32.vlgmr.msra.gmra.mxu0 %v149_v20 }
  0x18   :  { %1963 = vmatpush3.xpose.msra.mxu0 %v211_v25  ;;  %1951 = vmatprep.mubr.f32.mxu0 %v159_v23 }
  0x19   :  { %1957 = vmatmul.mubr.f32.vlgmr.msra.gmra.mxu1 %v150_v26 }
  0x1a   :  { %1971 = vmatpush3.xpose.msra.mxu1 %v2223_v10  ;;  %1959 = vmatprep.mubr.f32.mxu1 %v160_v28 }
  0x1b   :  { %1952 = vmatmul.mubr.f32.gmra.mxu0 %v169_v27  ;;  %v654_v27 = vld [vmem:[%s2479_s3 + $0x18] sm:$0xff] }
  0x1c   :  { %1964 = vmatprep.mubr.f32.mxu0 %v2225_v11  ;;  %v690_v36 = vsel %vm679_vm1, %v654_v27, 0 }
  0x1d   :  { %1960 = vmatmul.mubr.f32.gmra.mxu1 %v170_v33  ;;  %v2315_v50 = vand.u32 4294901760, %v690_v36 }
  0x1e   :  { %1972 = vmatprep.mubr.f32.mxu1 %v2225_v11  ;;  %v652_v11 = vld [vmem:[%s2479_s3 + $0x8] sm:$0xff] }
  0x1f   :  { %1965 = vmatmul.mubr.f32.vlgmr.msra.gmra.mxu0 %v2227_v12  ;;  %v684_v20 = vsel %vm679_vm1, %v652_v11, 0 }
  0x20   :  { %1967 = vmatprep.mubr.f32.mxu0 %v2233_v15  ;;  %v2306_v29 = vand.u32 4294901760, %v684_v20 }
  0x21   :  { %1973 = vmatmul.mubr.f32.vlgmr.msra.gmra.mxu1 %v2227_v12 }
  0x22   :  { %1975 = vmatprep.mubr.f32.mxu1 %v2233_v15  ;;  %v2313_v44 = vsub.f32 %v684_v20, %v2306_v29 }
  0x23   :  { %1968 = vmatmul.mubr.f32.gmra.mxu0 %v2244_v21 }
  0x24   :  { %1986 = vmatprep.mubr.f32.mxu0 %v765_v51 }
  0x25   :  { %1976 = vmatmul.mubr.f32.gmra.mxu1 %v2244_v21  ;;  %v653_v21 = vld [vmem:[%s2479_s3 + $0x10] sm:$0xff] }
  0x26   :  { %2000 = vmatprep.mubr.f32.mxu1 %v2286_v47  ;;  %v687_v30 = vsel %vm679_vm1, %v653_v21, 0 }
  0x27   :  { %v2310_v40 = vand.u32 4294901760, %v687_v30 }
  0x7e   :  { %v44_v52 = vpop.permute.xlu1 %43 }
  0x7f   :  { %v54_v55 = vpop.permute.xlu0 %53 }
  0x82   :  { %v39_v57 = vpop.permute.xlu1 %38 }
  0x83   :  { %v49_v4 = vpop.permute.xlu0 %48 }
  0x87   :  { %v677_v27 = vpop.permute.xlu0 %676 }
  0xcf   :  { %v1934_v53 = vpop.f32.mrf.mxu0 }
  0xd0   :  { %v155_v59 = vadd.f32 %v1934_v53, %v44_v52 }
  0xd1   :  { %v144_v54 = vpop.f32.mrf.mxu0  ;;  %v1942_v56 = vpop.f32.mrf.mxu1 }
  0xd2   :  { %v145_v62 = vadd.f32 %v144_v54, %v39_v57  ;;  %v257_v1 = vadd.f32 %v1942_v56, %v155_v59 }
  0xd3   :  { %v1937_v58 = vpop.f32.mrf.mxu0  ;;  %v250_v60 = vpop.f32.mrf.mxu1 }
  0xd4   :  { %v175_v2 = vadd.f32 %v1937_v58, %v54_v55  ;;  %v251_v6 = vadd.f32 %v250_v60, %v145_v62  ;;  %v2320_v55 = vsub.f32 %v687_v30, %v2310_v40  ;;  %v773_v58 = vand.u32 4294901760, %v2313_v44  ;;  %v672_v30 = vpop.permute.xlu1 %671 }
  0xd5   :  { %v164_v61 = vpop.f32.mrf.mxu0  ;;  %v1945_v63 = vpop.f32.mrf.mxu1  ;;  %v2326_v60 = vsub.f32 %v690_v36, %v2315_v50 }
  0xd6   :  { %v165_v7 = vadd.f32 %v164_v61, %v49_v4  ;;  %v269_v12 = vadd.f32 %v1945_v63, %v175_v2 }
  0xd7   :  { %v1950_v0 = vpop.f32.mrf.mxu0  ;;  %v262_v3 = vpop.f32.mrf.mxu1 }
  0xd8   :  { %v350_v8 = vadd.f32 %v1950_v0, %v257_v1  ;;  %v263_v16 = vadd.f32 %v262_v3, %v165_v7  ;;  %v783_v0 = vand.u32 4294901760, %v2320_v55  ;;  %v774_v3 = vsub.f32 %v2313_v44, %v773_v58  ;;  %v662_v36 = vpop.permute.xlu1 %661 }
  0xd9   :  { %v342_v5 = vpop.f32.mrf.mxu0  ;;  %v1958_v9 = vpop.f32.mrf.mxu1 }
  0xda   :  { %v343_v13 = vadd.f32 %v342_v5, %v251_v6  ;;  %v446_v17 = vadd.f32 %v1958_v9, %v350_v8  ;;  %v793_v5 = vand.u32 4294901760, %v2326_v60  ;;  %v784_v8 = vsub.f32 %v2320_v55, %v783_v0 }
  0xdb   :  { %v1953_v10 = vpop.f32.mrf.mxu0  ;;  %v437_v14 = vpop.f32.mrf.mxu1 }
  0xdc   :  { %v364_v18 = vadd.f32 %v1953_v10, %v269_v12  ;;  %v438_v23 = vadd.f32 %v437_v14, %v343_v13  ;;  %v775_v10 = vand.u32 4294901760, %v774_v3  ;;  %v794_v13 = vsub.f32 %v2326_v60, %v793_v5 }
  0xdd   :  { %v356_v15 = vpop.f32.mrf.mxu0  ;;  %v1961_v19 = vpop.f32.mrf.mxu1 }
  0xde   :  { %v357_v24 = vadd.f32 %v356_v15, %v263_v16  ;;  %v462_v31 = vadd.f32 %v1961_v19, %v364_v18  ;;  %v795_v20 = vand.u32 4294901760, %v794_v13 }
  0xdf   :  { %v1966_v22 = vpop.f32.mrf.mxu0  ;;  %v453_v26 = vpop.f32.mrf.mxu1 }
  0xe0   :  { %v542_v25 = vadd.f32 %v1966_v22, %v446_v17  ;;  %v454_v37 = vadd.f32 %v453_v26, %v357_v24  ;;  %v785_v17 = vand.u32 4294901760, %v784_v8 }
  0xe1   :  { %v535_v28 = vpop.f32.mrf.mxu0  ;;  %v1974_v33 = vpop.f32.mrf.mxu1 }
  0xe2   :  { %v536_v32 = vadd.f32 %v535_v28, %v438_v23  ;;  %v632_v34 = vadd.f32 %v1974_v33, %v542_v25  ;;  %v667_v33 = vpop.permute.xlu0 %666 }
  0xe3   :  { %v1969_v35 = vpop.f32.mrf.mxu0  ;;  %v625_v39 = vpop.f32.mrf.mxu1 }
  0xe4   :  { %v554_v38 = vadd.f32 %v1969_v35, %v462_v31  ;;  %v648_v41 = vmax.f32 %v632_v34, 0.0  ;;  %v626_v42 = vadd.f32 %v625_v39, %v536_v32 }
  0xe5   :  { %v547_v43 = vpop.f32.mrf.mxu0  ;;  %v1977_v46 = vpop.f32.mrf.mxu1 }
  0xe6   :  { %v548_v45 = vadd.f32 %v547_v43, %v454_v37  ;;  %v647_v51 = vmax.f32 %v626_v42, 0.0  ;;  %v644_v52 = vadd.f32 %v1977_v46, %v554_v38  ;;  %v2317_v53 = vand.u32 4294901760, %v648_v41 }
  0xe7   :  { %v637_v54 = vpop.f32.mrf.mxu1 }
  0xe8   :  { %v650_v56 = vmax.f32 %v644_v52, 0.0  ;;  %v638_v57 = vadd.f32 %v637_v54, %v548_v45  ;;  %v2323_v59 = vand.u32 4294901760, %v647_v51  ;;  %v841_v63 = vsub.f32 %v648_v41, %v2317_v53 }
  0xea   :  { %v2328_v61 = vand.u32 4294901760, %v650_v56  ;;  %v649_v62 = vmax.f32 %v638_v57, 0.0  ;;  %v848_v4 = vsub.f32 %v647_v51, %v2323_v59  ;;  %v842_v9 = vand.u32 4294901760, %v841_v63 }
  0xec   :  { %v827_v1 = vsub.f32 %v650_v56, %v2328_v61  ;;  %v2333_v2 = vand.u32 4294901760, %v649_v62  ;;  %1978 = vmatprep.subr.mxu0 %v2328_v61  ;;  %v849_v14 = vand.u32 4294901760, %v848_v4  ;;  %v843_v18 = vsub.f32 %v841_v63, %v842_v9 }
  0xed   :  { %1979 = vmatpush3.msra.mxu0 %v2328_v61 }
  0xee   :  { %v834_v6 = vsub.f32 %v649_v62, %v2333_v2  ;;  %1980 = vmatprep.subr.mxu0 %v2333_v2  ;;  %v828_v7 = vand.u32 4294901760, %v827_v1  ;;  %v850_v21 = vsub.f32 %v848_v4, %v849_v14  ;;  %v844_v22 = vand.u32 4294901760, %v843_v18 }
  0xef   :  { %1981 = vmatpush3.msra.mxu0 %v2333_v2 }
  0xf0   :  { %1982 = vmatprep.subr.mxu0 %v2317_v53  ;;  %v829_v11 = vsub.f32 %v827_v1, %v828_v7  ;;  %v835_v12 = vand.u32 4294901760, %v834_v6  ;;  %v851_v23 = vand.u32 4294901760, %v850_v21 }
  0xf1   :  { %1983 = vmatpush3.msra.mxu0 %v2317_v53 }
  0xf2   :  { %1984 = vmatprep.subr.mxu0 %v2323_v59  ;;  %v830_v15 = vand.u32 4294901760, %v829_v11  ;;  %v836_v16 = vsub.f32 %v834_v6, %v835_v12 }
  0xf3   :  { %1985 = vmatpush3.msra.mxu0 %v2323_v59 }
  0xf4   :  { %1987 = vmatmul.mubr.f32.vlgmr.msra.gmra.mxu0 %v775_v10  ;;  %1992 = vmatprep.subr.mxu1 %v830_v15  ;;  %v837_v19 = vand.u32 4294901760, %v836_v16 }
  0xf5   :  { %2006 = vmatprep.subr.mxu0 %v827_v1  ;;  %1993 = vmatpush3.msra.mxu1 %v830_v15 }
  0xf6   :  { %2007 = vmatpush3.msra.mxu0 %v827_v1  ;;  %1994 = vmatprep.subr.mxu1 %v837_v19 }
  0xf7   :  { %2008 = vmatprep.subr.mxu0 %v834_v6  ;;  %1989 = vmatprep.mubr.f32.mxu0 %v785_v17 }
  0xf8   :  { %1995 = vmatpush3.msra.mxu1 %v837_v19  ;;  %2009 = vmatpush3.msra.mxu0 %v834_v6 }
  0xf9   :  { %1990 = vmatmul.mubr.f32.gmra.mxu0 %v795_v20  ;;  %1996 = vmatprep.subr.mxu1 %v844_v22 }
  0xfa   :  { %2010 = vmatprep.subr.mxu0 %v841_v63  ;;  %1997 = vmatpush3.msra.mxu1 %v844_v22 }
  0xfb   :  { %2011 = vmatpush3.msra.mxu0 %v841_v63  ;;  %1998 = vmatprep.subr.mxu1 %v851_v23 }
  0xfc   :  { %2012 = vmatprep.subr.mxu0 %v848_v4  ;;  %1999 = vmatpush3.msra.mxu1 %v851_v23 }
  0xfd   :  { %2013 = vmatpush3.msra.mxu0 %v848_v4  ;;  %2001 = vmatmul.mubr.f32.vlgmr.msra.gmra.mxu1 %v2306_v29 }
  0xfe   :  { %2014 = vmatprep.mubr.f32.mxu0 %v2289_v48  ;;  %2020 = vmatprep.subr.mxu1 %v2328_v61  ;;  %v2159_v48 = vmov 0.0  }
  0xff   :  { %2034 = vmatprep.subr.mxu0 %v828_v7  ;;  %2015 = vmatmul.mubr.f32.vlgmr.msra.gmra.mxu0 %v2313_v44  ;;  %v1310_v44 = vld [vmem:[%s2481_s5] sm:$0xff]  ;;  %s2161_s5 = smov [#allocation2]  }
 0x100   :  { %2021 = vmatpush3.msra.mxu1 %v2328_v61  ;;  %2035 = vmatpush3.msra.mxu0 %v828_v7  ;;  %v1318_v57 = vsel %vm679_vm1, %v1310_v44, 0  ;;  %s1814_s9 = sshll.u32 %s2161_s5, 4  ;;  %s1815_s9 = int_to_ptr.vmem [resolvable:$true] %s1814_s9 }
 0x101   :  { %2022 = vmatprep.subr.mxu1 %v2333_v2  ;;  %2036 = vmatprep.subr.mxu0 %v835_v12  ;;  %v2404_v63 = vand.u32 4294901760, %v1318_v57  ;;  %s2136_s10 = scalar_lea.vmem %s1815_s9, 128  ;;  %p2141_p1 = scmp.lt.s32.totalorder %s1815_s9, %s1815_s9 }
 0x102   :  { %2003 = vmatprep.mubr.f32.mxu1 %v2310_v40  ;;  %2023 = vmatpush3.msra.mxu1 %v2333_v2  ;;  %p2137_p0 = scmp.ne.s32.totalorder %s1815_s9, %s2136_s10  ;;  %p2142_p2 = scmp.lt.s32.totalorder %s2136_s10, %s2136_s10 }
 0x103   :  { %2037 = vmatpush3.msra.mxu0 %v835_v12  ;;  %2004 = vmatmul.mubr.f32.gmra.mxu1 %v2315_v50 }
 0x104   :  { %2024 = vmatprep.subr.mxu1 %v2317_v53  ;;  %2038 = vmatprep.subr.mxu0 %v842_v9  ;;  %p2143_p3 = por %p2142_p2, %p2141_p1 }
 0x105   :  { %2017 = vmatprep.mubr.f32.mxu0 %v2320_v55  ;;  %2025 = vmatpush3.msra.mxu1 %v2317_v53 }
 0x106   :  { %2039 = vmatpush3.msra.mxu0 %v842_v9  ;;  %2026 = vmatprep.subr.mxu1 %v2323_v59  ;;  %v2407_v9 = vsub.f32 %v1318_v57, %v2404_v63  ;;  %p2144_p4 = pnand %p2143_p3, %p2137_p0 }
 0x107   :  { %2018 = vmatmul.mubr.f32.gmra.mxu0 %v2326_v60  ;;  %2040 = vmatprep.subr.mxu0 %v849_v14 }
 0x108   :  { %2027 = vmatpush3.msra.mxu1 %v2323_v59  ;;  %2028 = vmatprep.mubr.f32.mxu1 %v763_v49  ;;  %v1391_v19 = vand.u32 4294901760, %v2407_v9 }
 0x109   :  { %2041 = vmatpush3.msra.mxu0 %v849_v14  ;;  %2029 = vmatmul.mubr.f32.vlgmr.msra.gmra.mxu1 %v773_v58 }
 0x10a   :  { %2048 = vmatprep.subr.mxu1 %v2328_v61  ;;  %2042 = vmatprep.mubr.f32.mxu0 %v2286_v47 }
 0x10b   :  { %2049 = vmatpush3.msra.mxu1 %v2328_v61  ;;  %2043 = vmatmul.mubr.f32.vlgmr.msra.gmra.mxu0 %v2306_v29 }
 0x10c   :  { %2050 = vmatprep.subr.mxu1 %v2333_v2  ;;  %2031 = vmatprep.mubr.f32.mxu1 %v783_v0 }
 0x10d   :  { %2051 = vmatpush3.msra.mxu1 %v2333_v2  ;;  %2045 = vmatprep.mubr.f32.mxu0 %v2310_v40 }
 0x10e   :  { %2032 = vmatmul.mubr.f32.gmra.mxu1 %v793_v5  ;;  %2052 = vmatprep.subr.mxu1 %v2317_v53 }
 0x10f   :  { %2053 = vmatpush3.msra.mxu1 %v2317_v53  ;;  %2046 = vmatmul.mubr.f32.gmra.mxu0 %v2315_v50 }
 0x110   :  { %2054 = vmatprep.subr.mxu1 %v2323_v59  ;;  %2056 = vmatprep.mubr.f32.mxu1 %v2286_v47 }
 0x111   :  { %2055 = vmatpush3.msra.mxu1 %v2323_v59  ;;  %2062 = vmatprep.subr.mxu0 %v2159_v48 }
 0x112   :  { %2057 = vmatmul.mubr.f32.vlgmr.msra.gmra.mxu1 %v2306_v29  ;;  %2073 = vmatprep.subr.mxu1 %v2159_v48 }
 0x113   :  { %2059 = vmatprep.mubr.f32.mxu1 %v2310_v40  ;;  %2070 = vmatprep.mubr.msk.f32.mxu0 %vm2160_vm2, %v2159_v48 }
 0x116   :  { %2060 = vmatmul.mubr.f32.gmra.mxu1 %v2315_v50 }
 0x117   :  { %2081 = vmatprep.mubr.msk.f32.mxu1 %vm2160_vm2, %v2159_v48 }
 0x1b4   :  { %v1988_v47 = vpop.f32.mrf.mxu0 }
 0x1b5   :  { %v778_v34 = vadd.f32 %v1988_v47, %v667_v33 }
 0x1b6   :  { %v767_v49 = vpop.f32.mrf.mxu0 }
 0x1b7   :  { %v768_v37 = vadd.f32 %v767_v49, %v662_v36 }
 0x1b9   :  { %v1991_v24 = vpop.f32.mrf.mxu0 }
 0x1ba   :  { %v798_v40 = vadd.f32 %v1991_v24, %v677_v27  ;;  %v1392_v24 = vsub.f32 %v2407_v9, %v1391_v19 }
 0x1bb   :  { %v787_v25 = vpop.f32.mrf.mxu0 }
 0x1bc   :  { %v788_v45 = vadd.f32 %v787_v25, %v672_v30 }
 0x1bd   :  { %v2002_v26 = vpop.f32.mrf.mxu1 }
 0x1be   :  { %v895_v38 = vadd.f32 %v2002_v26, %v778_v34 }
 0x1bf   :  { %v888_v28 = vpop.f32.mrf.mxu1  ;;  %v2016_v29 = vpop.f32.mrf.mxu0 }
 0x1c0   :  { %v889_v41 = vadd.f32 %v888_v28, %v768_v37  ;;  %v994_v46 = vadd.f32 %v2016_v29, %v895_v38 }
 0x1c1   :  { %v986_v32 = vpop.f32.mrf.mxu0 }
 0x1c2   :  { %v987_v53 = vadd.f32 %v986_v32, %v889_v41 }
 0x1c3   :  { %v2005_v31 = vpop.f32.mrf.mxu1 }
 0x1c4   :  { %v907_v50 = vadd.f32 %v2005_v31, %v798_v40  ;;  %v1393_v31 = vand.u32 4294901760, %v1392_v24 }
 0x1c5   :  { %v900_v35 = vpop.f32.mrf.mxu1 }
 0x1c6   :  { %v901_v54 = vadd.f32 %v900_v35, %v788_v45 }
 0x1c7   :  { %v2019_v39 = vpop.f32.mrf.mxu0 }
 0x1c8   :  { %v1008_v59 = vadd.f32 %v2019_v39, %v907_v50  ;;  %v1315_v50 = vpop.permute.xlu0 %1314 }
 0x1c9   :  { %v1000_v42 = vpop.f32.mrf.mxu0  ;;  %v2030_v43 = vpop.f32.mrf.mxu1 }
 0x1ca   :  { %v1093_v55 = vadd.f32 %v2030_v43, %v994_v46  ;;  %v1001_v0 = vadd.f32 %v1000_v42, %v901_v54 }
 0x1cb   :  { %v1084_v51 = vpop.f32.mrf.mxu1  ;;  %v2044_v52 = vpop.f32.mrf.mxu0 }
 0x1cc   :  { %v1085_v60 = vadd.f32 %v1084_v51, %v987_v53  ;;  %v1198_v1 = vadd.f32 %v2044_v52, %v1093_v55 }
 0x1cd   :  { %v1191_v56 = vpop.f32.mrf.mxu0 }
 0x1ce   :  { %v2033_v58 = vpop.f32.mrf.mxu1  ;;  %v1192_v4 = vadd.f32 %v1191_v56, %v1085_v60 }
 0x1cf   :  { %v2047_v62 = vpop.f32.mrf.mxu0  ;;  %v1109_v2 = vadd.f32 %v2033_v58, %v1008_v59 }
 0x1d0   :  { %v1100_v61 = vpop.f32.mrf.mxu1 }
 0x1d1   :  { %v1101_v5 = vadd.f32 %v1100_v61, %v1001_v0  ;;  %v1203_v7 = vpop.f32.mrf.mxu0  ;;  %v1210_v10 = vadd.f32 %v2047_v62, %v1109_v2 }
 0x1d2   :  { %v2058_v3 = vpop.f32.mrf.mxu1 }
 0x1d3   :  { %v1291_v6 = vadd.f32 %v2058_v3, %v1198_v1  ;;  %v1204_v14 = vadd.f32 %v1203_v7, %v1101_v5 }
 0x1d4   :  { %v1284_v8 = vpop.f32.mrf.mxu1 }
 0x1d5   :  { %v1307_v11 = vmax.f32 %v1291_v6, 0.0  ;;  %v1285_v12 = vadd.f32 %v1284_v8, %v1192_v4 }
 0x1d6   :  { %v2061_v13 = vpop.f32.mrf.mxu1 }
 0x1d7   :  { %v2409_v15 = vand.u32 4294901760, %v1307_v11  ;;  %v1306_v16 = vmax.f32 %v1285_v12, 0.0  ;;  %v1303_v17 = vadd.f32 %v2061_v13, %v1210_v10 }
 0x1d8   :  { %v1296_v18 = vpop.f32.mrf.mxu1 }
 0x1d9   :  { %v2412_v20 = vand.u32 4294901760, %v1306_v16  ;;  %v1309_v21 = vmax.f32 %v1303_v17, 0.0  ;;  %v1297_v22 = vadd.f32 %v1296_v18, %v1204_v14  ;;  %v1439_v23 = vsub.f32 %v1307_v11, %v2409_v15 }
 0x1db   :  { %v2415_v47 = vand.u32 4294901760, %v1309_v21  ;;  %v1308_v49 = vmax.f32 %v1297_v22, 0.0  ;;  %v1446_v25 = vsub.f32 %v1306_v16, %v2412_v20  ;;  %v1440_v28 = vand.u32 4294901760, %v1439_v23 }
 0x1dd   :  { %v1425_v26 = vsub.f32 %v1309_v21, %v2415_v47  ;;  %v2422_v27 = vand.u32 4294901760, %v1308_v49  ;;  %2063 = vmatpush3.msra.mxu0 %v2415_v47  ;;  %v1447_v32 = vand.u32 4294901760, %v1446_v25  ;;  %v1441_v35 = vsub.f32 %v1439_v23, %v1440_v28 }
 0x1de   :  { %2064 = vmatprep.subr.mxu0 %v2159_v48 }
 0x1df   :  { %v1426_v29 = vand.u32 4294901760, %v1425_v26  ;;  %v1432_v30 = vsub.f32 %v1308_v49, %v2422_v27  ;;  %2065 = vmatpush3.msra.mxu0 %v2422_v27  ;;  %v1448_v38 = vsub.f32 %v1446_v25, %v1447_v32  ;;  %v1442_v40 = vand.u32 4294901760, %v1441_v35 }
 0x1e0   :  { %2066 = vmatprep.subr.mxu0 %v2159_v48 }
 0x1e1   :  { %v1427_v33 = vsub.f32 %v1425_v26, %v1426_v29  ;;  %v1433_v34 = vand.u32 4294901760, %v1432_v30  ;;  %2067 = vmatpush3.msra.mxu0 %v2409_v15  ;;  %v1449_v41 = vand.u32 4294901760, %v1448_v38 }
 0x1e2   :  { %2068 = vmatprep.subr.mxu0 %v2159_v48 }
 0x1e3   :  { %v1434_v36 = vsub.f32 %v1432_v30, %v1433_v34  ;;  %2069 = vmatpush3.msra.mxu0 %v2412_v20  ;;  %v1428_v37 = vand.u32 4294901760, %v1427_v33 }
 0x1e4   :  { %2071 = vmatmul.mubr.f32.vlgmr.msra.gmra.mxu0 %v1393_v31  ;;  %2084 = vmatprep.subr.mxu0 %v2159_v48 }
 0x1e5   :  { %2074 = vmatpush3.msra.mxu1 %v1428_v37  ;;  %2085 = vmatpush3.msra.mxu0 %v1425_v26  ;;  %v1435_v39 = vand.u32 4294901760, %v1434_v36 }
 0x1e6   :  { %2075 = vmatprep.subr.mxu1 %v2159_v48  ;;  %2086 = vmatprep.subr.mxu0 %v2159_v48 }
 0x1e7   :  { %2076 = vmatpush3.msra.mxu1 %v1435_v39  ;;  %2087 = vmatpush3.msra.mxu0 %v1432_v30 }
 0x1e8   :  { %2077 = vmatprep.subr.mxu1 %v2159_v48  ;;  %2088 = vmatprep.subr.mxu0 %v2159_v48 }
 0x1e9   :  { %2078 = vmatpush3.msra.mxu1 %v1442_v40  ;;  %2089 = vmatpush3.msra.mxu0 %v1439_v23 }
 0x1ea   :  { %2079 = vmatprep.subr.mxu1 %v2159_v48  ;;  %2090 = vmatprep.subr.mxu0 %v2159_v48 }
 0x1eb   :  { %2080 = vmatpush3.msra.mxu1 %v1449_v41  ;;  %2091 = vmatpush3.msra.mxu0 %v1446_v25 }
 0x1ec   :  { %2082 = vmatmul.mubr.f32.vlgmr.msra.gmra.mxu1 %v2404_v63  ;;  %2092 = vmatprep.mubr.msk.f32.mxu0 %vm2160_vm2, %v2159_v48 }
 0x1ed   :  { %2095 = vmatprep.subr.mxu1 %v2159_v48  ;;  %2106 = vmatprep.subr.mxu0 %v2159_v48 }
 0x1ee   :  { %2093 = vmatmul.mubr.f32.vlgmr.msra.gmra.mxu0 %v2407_v9  ;;  %2096 = vmatpush3.msra.mxu1 %v2415_v47 }
 0x1ef   :  { %2107 = vmatpush3.msra.mxu0 %v1426_v29  ;;  %2097 = vmatprep.subr.mxu1 %v2159_v48 }
 0x1f0   :  { %2108 = vmatprep.subr.mxu0 %v2159_v48  ;;  %2098 = vmatpush3.msra.mxu1 %v2422_v27 }
 0x1f1   :  { %2109 = vmatpush3.msra.mxu0 %v1433_v34  ;;  %2099 = vmatprep.subr.mxu1 %v2159_v48 }
 0x1f2   :  { %2110 = vmatprep.subr.mxu0 %v2159_v48  ;;  %2100 = vmatpush3.msra.mxu1 %v2409_v15 }
 0x1f3   :  { %2111 = vmatpush3.msra.mxu0 %v1440_v28  ;;  %2101 = vmatprep.subr.mxu1 %v2159_v48 }
 0x1f4   :  { %2112 = vmatprep.subr.mxu0 %v2159_v48  ;;  %2102 = vmatpush3.msra.mxu1 %v2412_v20 }
 0x1f5   :  { %2103 = vmatprep.mubr.msk.f32.mxu1 %vm2160_vm2, %v2159_v48  ;;  %2113 = vmatpush3.msra.mxu0 %v1447_v32 }
 0x1f6   :  { %2104 = vmatmul.mubr.f32.vlgmr.msra.gmra.mxu1 %v1391_v19  ;;  %2117 = vmatprep.subr.mxu1 %v2159_v48 }
 0x1f7   :  { %2114 = vmatprep.mubr.msk.f32.mxu0 %vm2160_vm2, %v2159_v48  ;;  %2118 = vmatpush3.msra.mxu1 %v2415_v47 }
 0x1f8   :  { %2115 = vmatmul.mubr.f32.vlgmr.msra.gmra.mxu0 %v2404_v63  ;;  %2119 = vmatprep.subr.mxu1 %v2159_v48 }
 0x1f9   :  { %2120 = vmatpush3.msra.mxu1 %v2422_v27  ;;  %2125 = vmatprep.mubr.msk.f32.mxu1 %vm2160_vm2, %v2159_v48 }
 0x1fa   :  { %2121 = vmatprep.subr.mxu1 %v2159_v48 }
 0x1fb   :  { %2122 = vmatpush3.msra.mxu1 %v2409_v15 }
 0x1fc   :  { %2123 = vmatprep.subr.mxu1 %v2159_v48 }
 0x1fd   :  { %2124 = vmatpush3.msra.mxu1 %v2412_v20 }
 0x1fe   :  { %2126 = vmatmul.mubr.f32.vlgmr.msra.gmra.mxu1 %v2404_v63 }
 0x2a4   :  { %v1395_v42 = vpop.f32.mrf.mxu0 }
 0x2a5   :  { %v1396_v52 = vadd.f32 %v1395_v42, %v1315_v50 }
 0x2a6   :  { %v2072_v43 = vpop.f32.mrf.mxu0 }
 0x2ac   :  { %v1486_v44 = vpop.f32.mrf.mxu1 }
 0x2ad   :  { %v1487_v53 = vadd.f32 %v1486_v44, %v1396_v52 }
 0x2ae   :  { %v2083_v45 = vpop.f32.mrf.mxu1  ;;  %v1566_v46 = vpop.f32.mrf.mxu0 }
 0x2af   :  { %v1567_v55 = vadd.f32 %v1566_v46, %v1487_v53 }
 0x2b0   :  { %v2094_v51 = vpop.f32.mrf.mxu0 }
 0x2b6   :  { %v1643_v54 = vpop.f32.mrf.mxu1 }
 0x2b7   :  { %v1644_v58 = vadd.f32 %v1643_v54, %v1567_v55 }
 0x2b8   :  { %v2105_v56 = vpop.f32.mrf.mxu1  ;;  %v1726_v57 = vpop.f32.mrf.mxu0 }
 0x2b9   :  { %v1727_v48 = vadd.f32 %v1726_v57, %v1644_v58 }
 0x2ba   :  { %v2116_v59 = vpop.f32.mrf.mxu0 }
 0x2be   :  { %v1801_v60 = vpop.f32.mrf.mxu1 }
 0x2bf   :  { %v1802_v61 = vadd.f32 %v1801_v60, %v1727_v48 }
 0x2c0   :  { %v2127_v62 = vpop.f32.mrf.mxu1 }
 0x2c1   :  { %2134 = vtanh.f32 %v1802_v61 }
 0x2ce   :  { %v2135_v63 = vpop.eup %2134 }
 0x2cf   :  { %1807 = vst.msk [vmem:[#allocation2] sm:$0xff] %vm1806_vm3, %v2135_v63 }
 0x2d0   :  { %2147 = shalt.err (!%p2144_p4)
}
 0x2d1   :  { %1817 = dma.vmem_to_hbm [thread:$0]  %s1815_s9, 128, %s2483_s7, [#allocation3]  }
 0x2d2   :  { %2156 = dma.done.wait [#allocation3], 128  }
 0x2d3   :  { %2157 = vsyncadd [#allocation3], 4294967168 }
 0x2d4   :  { %1821 = vsyncpa [#allocation3], 1 }

</bundles_post_ra>
